<compile_context>
chip_gen: v7x
topology: tpu7x:2x2x1
jax: 0.10.0
libtpu: 0.0.40
codegen_flags: <defaults>
</compile_context>

<pallas_src>
import functools

import jax
import jax.numpy as jnp
import numpy as np
from jax.experimental import pallas as pl
from jax.experimental.pallas import tpu as pltpu

LANES = 128          # TPU lane width; every packed slab uses 128 lanes
NEG_INF = -1e9       # additive mask for cross-batch attention scores
DENOM_EPS = 1e-20    # guards 0/0 if an entire softmax block underflows


def _layout(G, L, B, T, H):
    """Static row offsets of the packed weight (bf16) / constant (f32) slabs."""
    d = G // H
    BT = B * T
    BHT = H * BT
    assert G % H == 0 and d >= 1
    assert BHT == LANES, "kernel assumes the (head,batch,seq) slab is 128 lanes"
    assert 4 * G <= LANES and (G + L) <= LANES
    assert BT % 16 == 0 and G % 16 == 0, "bf16 sublane-tile alignment"

    out_p = pl.cdiv(G + L, LANES) * LANES
    # wpack rows (bf16, 16-row sublane tiles)
    w_proj = 0                       # (LANES, LANES)  fused [q*s | v | gate | la]
    w_spread = w_proj + LANES        # (BHT, BHT)      per-block softmax sum matrix
    w_lkT = w_spread + BHT           # (G, L)          (Wfa @ Wk)^T
    w_comb = w_lkT + G               # (2G, out_p)     [Wo@Wout ; Wout]
    w_rows = w_comb + 2 * G
    # cpack rows (f32, 8-row sublane tiles)
    c_hmT = 0                        # (G, BHT)   head mask, transposed
    c_hm = c_hmT + G                 # (BHT, G)   head mask
    c_kbias = c_hm + BHT             # (G, BHT)   masked, tiled k bias
    c_negb = c_kbias + G             # (BT, BHT)  0 / -1e9 cross-batch score bias
    c_dfix = c_negb + BT             # (BT, BHT)  eps / 1.0 denominator fix
    c_bproj = c_dfix + BT            # (1, LANES) fused projection bias (8 rows rsv)
    c_bcomb = c_bproj + 8            # (1, LANES) fused output bias     (8 rows rsv)
    c_rows = c_bcomb + 8
    return dict(d=d, BT=BT, BHT=BHT, out_p=out_p,
                w_proj=w_proj, w_spread=w_spread, w_lkT=w_lkT, w_comb=w_comb,
                w_rows=w_rows,
                c_hmT=c_hmT, c_hm=c_hm, c_kbias=c_kbias, c_negb=c_negb,
                c_dfix=c_dfix, c_bproj=c_bproj, c_bcomb=c_bcomb, c_rows=c_rows)


def _fusion_kernel(x_ref, w_ref, c_ref, o_ref, *, G, L, BT, H, lo):
    f32, bf16 = jnp.float32, jnp.bfloat16
    BHT = H * BT

    # ---- packed inputs (static, tile-aligned ref slices; 3 input DMAs) --------
    xg = x_ref[0:BT, :]                                    # (BT,128) [g | loc | 0]
    locT = x_ref[BT:BT + L, :]                             # (L, BHT) loc^T tiled xH

    wproj = w_ref[lo["w_proj"]:lo["w_proj"] + LANES, :]    # (128,128)
    spread = w_ref[lo["w_spread"]:lo["w_spread"] + BHT, :]  # (128,128) bf16 0/1
    wlkT = w_ref[lo["w_lkT"]:lo["w_lkT"] + G, 0:L]         # (G, L)
    w_att = w_ref[lo["w_comb"]:lo["w_comb"] + G, :]        # (G, 128)  Wo @ Wout
    w_gl = w_ref[lo["w_comb"] + G:lo["w_comb"] + 2 * G, :]  # (G, 128) Wout

    hmaskT = c_ref[lo["c_hmT"]:lo["c_hmT"] + G, :]          # (G, BHT)
    hmask = c_ref[lo["c_hm"]:lo["c_hm"] + BHT, 0:G]         # (BHT, G)
    kbias = c_ref[lo["c_kbias"]:lo["c_kbias"] + G, :]       # (G, BHT)
    negb = c_ref[lo["c_negb"]:lo["c_negb"] + BT, :]         # (BT, BHT)
    dfix = c_ref[lo["c_dfix"]:lo["c_dfix"] + BT, :]         # (BT, BHT)
    bproj = c_ref[lo["c_bproj"]:lo["c_bproj"] + 1, :]       # (1, 128)
    bcomb = c_ref[lo["c_bcomb"]:lo["c_bcomb"] + 1, :]       # (1, 128)

    # ---- fused projection: ONE matmul gives q*scale | v | gate | la ----------
    proj = jnp.dot(xg, wproj, preferred_element_type=f32) + bproj    # (BT, 128)
    q = proj[:, 0:G]
    v = proj[:, G:2 * G]
    gate_logits = proj[:, 2 * G:3 * G]
    la = proj[:, 3 * G:4 * G]

    # ---- key slab, built pre-transposed (no in-kernel transpose) -------------
    # kslabT[g, c] = k[c % BT, g] if head(g) == head-block(c) else 0
    kslabT = (jnp.dot(wlkT, locT, preferred_element_type=f32) * hmaskT
              + kbias).astype(bf16)                                   # (G, BHT)

    # ---- value slab, block-diagonal along heads -------------------------------
    vslab = (jnp.concatenate([v] * H, axis=0) * hmask).astype(bf16)   # (BHT, G)

    # ---- block-diagonal multi-head attention, all heads & batches at once -----
    s = jnp.dot(q.astype(bf16), kslabT, preferred_element_type=f32) + negb
    s_max = jnp.max(s, axis=-1, keepdims=True)
    e = jnp.exp(s - s_max)                                   # cross-batch -> 0
    denom = jnp.dot(e.astype(bf16), spread, preferred_element_type=f32) + dfix
    p = e * pl.reciprocal(denom, approx=True)                # per-block softmax
    attn = jnp.dot(p.astype(bf16), vslab, preferred_element_type=f32)  # (BT, G)

    # ---- sigmoid gate (single EUP tanh) + fused, lane-dense output projection -
    gates = 0.5 * (1.0 + jnp.tanh(0.5 * gate_logits))
    gl = gates * la
    o_ref[...] = (jnp.dot(attn.astype(bf16), w_att, preferred_element_type=f32)
                  + jnp.dot(gl.astype(bf16), w_gl, preferred_element_type=f32)
                  + bcomb)


def make_packed_params(raw, num_heads, batch, seq):
    """Fold/fuse/pad every parameter and constant into two packed slabs."""
    r = {k: np.asarray(v, np.float32) for k, v in raw.items()}
    G = r["wq_t"].shape[0]
    L = r["wfa_t"].shape[0]
    H = num_heads
    B, T = batch, seq
    lo = _layout(G, L, B, T, H)
    d, BT, BHT = lo["d"], lo["BT"], lo["BHT"]
    out_dim = G + L
    scale = 1.0 / np.sqrt(d)

    # algebraic folds
    wlk = r["wfa_t"] @ r["wk_t"]                      # k = loc @ wlk + blk
    blk = r["bfa"] @ r["wk_t"] + r["bk"]              # (1, G)
    wo_wout = r["wo_t"] @ r["wout_t"]                 # (G, out_dim)
    bcomb = r["bo"] @ r["wout_t"] + r["bout"]         # (1, out_dim)

    # precomputed masks / softmax helpers (nothing iota-built in-kernel)
    gi = np.arange(G)[:, None]
    ci = np.arange(BHT)[None, :]
    hmaskT = (gi // d == ci // BT).astype(np.float32)             # (G, BHT)
    hmask = hmaskT.T                                              # (BHT, G)
    kbias = blk.reshape(G, 1) * hmaskT                            # (G, BHT)
    ji = np.arange(BHT)[:, None]
    spread = (ji // T == ci // T).astype(np.float32)              # (BHT, BHT)
    ti = np.arange(BT)[:, None]
    same_b = (ti // T) == ((ci // T) % B)                         # (BT, BHT)
    negb = np.where(same_b, 0.0, NEG_INF).astype(np.float32)
    dfix = np.where(same_b, DENOM_EPS, 1.0).astype(np.float32)

    # packed bf16 weight slab
    wpack = np.zeros((lo["w_rows"], LANES), np.float32)
    wp = wpack[lo["w_proj"]:lo["w_proj"] + LANES]
    wp[0:G, 0:G] = r["wq_t"] * scale
    wp[0:G, G:2 * G] = r["wv_t"]
    wp[0:G, 2 * G:3 * G] = r["wg_t"]
    wp[G:G + L, 3 * G:4 * G] = r["wfa_t"]
    wpack[lo["w_spread"]:lo["w_spread"] + BHT, 0:BHT] = spread
    wpack[lo["w_lkT"]:lo["w_lkT"] + G, 0:L] = wlk.T
    wpack[lo["w_comb"]:lo["w_comb"] + G, 0:out_dim] = wo_wout
    wpack[lo["w_comb"] + G:lo["w_comb"] + 2 * G, 0:out_dim] = r["wout_t"]

    # packed f32 constant / bias slab
    cpack = np.zeros((lo["c_rows"], LANES), np.float32)
    cpack[lo["c_hmT"]:lo["c_hmT"] + G, 0:BHT] = hmaskT
    cpack[lo["c_hm"]:lo["c_hm"] + BHT, 0:G] = hmask
    cpack[lo["c_kbias"]:lo["c_kbias"] + G, 0:BHT] = kbias
    cpack[lo["c_negb"]:lo["c_negb"] + BT, 0:BHT] = negb
    cpack[lo["c_dfix"]:lo["c_dfix"] + BT, 0:BHT] = dfix
    bproj = np.concatenate([r["bq"] * scale, r["bv"], r["bg"], r["bfa"]], axis=1)
    cpack[lo["c_bproj"], 0:4 * G] = bproj[0]
    cpack[lo["c_bcomb"], 0:out_dim] = bcomb[0]

    return jnp.asarray(wpack, jnp.bfloat16), jnp.asarray(cpack, jnp.float32)


@functools.partial(jax.jit, static_argnames=("num_heads",))
def modal_fusion_forward(global_features, local_features, wpack, cpack, num_heads):
    B, T, G = global_features.shape
    L = local_features.shape[-1]
    H = num_heads
    BT = B * T
    lo = _layout(G, L, B, T, H)
    out_dim = G + L

    g2 = global_features.reshape(BT, G)
    l2 = local_features.reshape(BT, L)
    # Pack both activations AND the tiled transpose of `loc` (needed for the
    # pre-transposed key slab) into ONE bf16 input => a single input DMA.
    top = jnp.pad(jnp.concatenate([g2, l2], axis=1), ((0, 0), (0, LANES - G - L)))
    locT_tiled = jnp.tile(l2.T, (1, H))                     # (L, H*B*T) == (L, 128)
    x_in = jnp.concatenate([top, locT_tiled], axis=0).astype(jnp.bfloat16)

    kernel = functools.partial(_fusion_kernel, G=G, L=L, BT=BT, H=H, lo=lo)
    out = pl.pallas_call(
        kernel,
        out_shape=jax.ShapeDtypeStruct((BT, lo["out_p"]), jnp.float32),
        in_specs=[pl.BlockSpec(memory_space=pltpu.MemorySpace.VMEM)] * 3,
        out_specs=pl.BlockSpec(memory_space=pltpu.MemorySpace.VMEM),
        # Explicit scoped-VMEM budget (tiny here; matters when shapes scale).
        compiler_params=pltpu.CompilerParams(vmem_limit_bytes=16 * 1024 * 1024),
    )(x_in, wpack, cpack)

    return out[:, :out_dim].reshape(B, T, out_dim)


def init_params(key, G, L):
    """Deterministic synthetic parameters. Weights stored as (in, out)."""
    def linear(kw, kb, fan_in, fan_out):
        w = jax.random.normal(kw, (fan_in, fan_out), jnp.float32) / jnp.sqrt(
            jnp.float32(fan_in))
        b = 0.01 * jax.random.normal(kb, (1, fan_out), jnp.float32)
        return w, b

    keys = jax.random.split(key, 14)
    params = {}
    params["wfa_t"], params["bfa"] = linear(keys[0], keys[1], L, G)
    params["wq_t"], params["bq"] = linear(keys[2], keys[3], G, G)
    params["wk_t"], params["bk"] = linear(keys[4], keys[5], G, G)
    params["wv_t"], params["bv"] = linear(keys[6], keys[7], G, G)
    params["wo_t"], params["bo"] = linear(keys[8], keys[9], G, G)
    params["wg_t"], params["bg"] = linear(keys[10], keys[11], G, G)
    params["wout_t"], params["bout"] = linear(keys[12], keys[13], G, G + L)
    return params


def reference(gf, lf, p, num_heads):
    """Pure-JAX f32 reference mirroring the PyTorch forward pass."""
    B, T, G = gf.shape
    d = G // num_heads
    la = lf @ p["wfa_t"] + p["bfa"]
    q = (gf @ p["wq_t"] + p["bq"]) * (1.0 / jnp.sqrt(jnp.float32(d)))
    k = la @ p["wk_t"] + p["bk"]
    v = gf @ p["wv_t"] + p["bv"]
    qh = q.reshape(B, T, num_heads, d)
    kh = k.reshape(B, T, num_heads, d)
    vh = v.reshape(B, T, num_heads, d)
    s = jnp.einsum("bqhd,bkhd->bhqk", qh, kh)
    pr = jax.nn.softmax(s, axis=-1)
    attn = jnp.einsum("bhqk,bkhd->bqhd", pr, vh).reshape(B, T, G)
    attn_out = attn @ p["wo_t"] + p["bo"]
    gates = jax.nn.sigmoid(gf @ p["wg_t"] + p["bg"])
    combined = attn_out + gates * la
    return combined @ p["wout_t"] + p["bout"]


if __name__ == "__main__":
    B, T, G, L, H = 2, 8, 32, 16, 8   # batch, seq, global_dim, local_dim, heads

    key = jax.random.PRNGKey(0)
    kg, kl, kp = jax.random.split(key, 3)
    global_features = jax.random.normal(kg, (B, T, G), jnp.float32)
    local_features = jax.random.normal(kl, (B, T, L), jnp.float32)

    raw_params = init_params(kp, G, L)
    wpack, cpack = make_packed_params(raw_params, H, B, T)

    out = modal_fusion_forward(global_features, local_features, wpack, cpack, H)
    out = jax.block_until_ready(out)

    ref = reference(global_features, local_features, raw_params, H)
    assert out.shape == (B, T, G + L)
    # bf16 matmul operands (f32 accumulation) -> loosened tolerance vs f32 ref.
    np.testing.assert_allclose(np.asarray(out), np.asarray(ref),
                               rtol=2e-2, atol=2e-2)
    print("KERNEL_OK")
</pallas_src>

<mosaic_0001>
module attributes {stable_mosaic.version = 11 : i64} {
  func.func @_fusion_kernel(%arg0: memref<32x128xbf16, #tpu.memory_space<vmem>>, %arg1: memref<352x128xbf16, #tpu.memory_space<vmem>>, %arg2: memref<240x128xf32, #tpu.memory_space<vmem>>, %arg3: memref<16x128xf32, #tpu.memory_space<vmem>>) attributes {dimension_semantics = [], scalar_prefetch = 0 : i64, scratch_operands = 0 : i64, tpu.core_type = #tpu.core_type<tc>} {
    %c0 = arith.constant 0 : index
    %c0_0 = arith.constant 0 : index
    %0 = vector.load %arg0[%c0, %c0_0] : memref<32x128xbf16, #tpu.memory_space<vmem>>, vector<16x128xbf16>
    %c16 = arith.constant 16 : index
    %c0_1 = arith.constant 0 : index
    %1 = vector.load %arg0[%c16, %c0_1] : memref<32x128xbf16, #tpu.memory_space<vmem>>, vector<16x128xbf16>
    %c0_2 = arith.constant 0 : index
    %c0_3 = arith.constant 0 : index
    %2 = vector.load %arg1[%c0_2, %c0_3] : memref<352x128xbf16, #tpu.memory_space<vmem>>, vector<128x128xbf16>
    %c128 = arith.constant 128 : index
    %c0_4 = arith.constant 0 : index
    %3 = vector.load %arg1[%c128, %c0_4] : memref<352x128xbf16, #tpu.memory_space<vmem>>, vector<128x128xbf16>
    %c256 = arith.constant 256 : index
    %c0_5 = arith.constant 0 : index
    %4 = vector.load %arg1[%c256, %c0_5] : memref<352x128xbf16, #tpu.memory_space<vmem>>, vector<32x16xbf16>
    %c288 = arith.constant 288 : index
    %c0_6 = arith.constant 0 : index
    %5 = vector.load %arg1[%c288, %c0_6] : memref<352x128xbf16, #tpu.memory_space<vmem>>, vector<32x128xbf16>
    %c320 = arith.constant 320 : index
    %c0_7 = arith.constant 0 : index
    %6 = vector.load %arg1[%c320, %c0_7] : memref<352x128xbf16, #tpu.memory_space<vmem>>, vector<32x128xbf16>
    %c0_8 = arith.constant 0 : index
    %c0_9 = arith.constant 0 : index
    %7 = vector.load %arg2[%c0_8, %c0_9] : memref<240x128xf32, #tpu.memory_space<vmem>>, vector<32x128xf32>
    %c32 = arith.constant 32 : index
    %c0_10 = arith.constant 0 : index
    %8 = vector.load %arg2[%c32, %c0_10] : memref<240x128xf32, #tpu.memory_space<vmem>>, vector<128x32xf32>
    %c160 = arith.constant 160 : index
    %c0_11 = arith.constant 0 : index
    %9 = vector.load %arg2[%c160, %c0_11] : memref<240x128xf32, #tpu.memory_space<vmem>>, vector<32x128xf32>
    %c192 = arith.constant 192 : index
    %c0_12 = arith.constant 0 : index
    %10 = vector.load %arg2[%c192, %c0_12] : memref<240x128xf32, #tpu.memory_space<vmem>>, vector<16x128xf32>
    %c208 = arith.constant 208 : index
    %c0_13 = arith.constant 0 : index
    %11 = vector.load %arg2[%c208, %c0_13] : memref<240x128xf32, #tpu.memory_space<vmem>>, vector<16x128xf32>
    %c224 = arith.constant 224 : index
    %c0_14 = arith.constant 0 : index
    %12 = vector.load %arg2[%c224, %c0_14] : memref<240x128xf32, #tpu.memory_space<vmem>>, vector<1x128xf32>
    %c232 = arith.constant 232 : index
    %c0_15 = arith.constant 0 : index
    %13 = vector.load %arg2[%c232, %c0_15] : memref<240x128xf32, #tpu.memory_space<vmem>>, vector<1x128xf32>
    %cst = arith.constant dense<0.000000e+00> : vector<16x128xf32>
    %14 = tpu.matmul %0, %2, %cst {dimension_numbers = #tpu.dot_dimension_numbers<[1], [0], [0], [1], [0, 0, 1, 1], [], []>} : vector<16x128xbf16>, vector<128x128xbf16>, vector<16x128xf32> -> vector<16x128xf32>
    %15 = vector.broadcast %12 : vector<1x128xf32> to vector<16x128xf32>
    %16 = arith.addf %14, %15 : vector<16x128xf32>
    %17 = vector.extract_strided_slice %16 {offsets = [0, 0], sizes = [16, 32], strides = [1, 1]} : vector<16x128xf32> to vector<16x32xf32>
    %18 = vector.extract_strided_slice %16 {offsets = [0, 32], sizes = [16, 32], strides = [1, 1]} : vector<16x128xf32> to vector<16x32xf32>
    %19 = vector.extract_strided_slice %16 {offsets = [0, 64], sizes = [16, 32], strides = [1, 1]} : vector<16x128xf32> to vector<16x32xf32>
    %20 = vector.extract_strided_slice %16 {offsets = [0, 96], sizes = [16, 32], strides = [1, 1]} : vector<16x128xf32> to vector<16x32xf32>
    %cst_16 = arith.constant dense<0.000000e+00> : vector<32x128xf32>
    %21 = tpu.matmul %4, %1, %cst_16 {dimension_numbers = #tpu.dot_dimension_numbers<[1], [0], [0], [1], [0, 0, 1, 1], [], []>} : vector<32x16xbf16>, vector<16x128xbf16>, vector<32x128xf32> -> vector<32x128xf32>
    %22 = arith.mulf %21, %7 : vector<32x128xf32>
    %23 = arith.addf %22, %9 : vector<32x128xf32>
    %24 = arith.truncf %23 : vector<32x128xf32> to vector<32x128xbf16>
    %25 = tpu.concatenate %18, %18, %18, %18, %18, %18, %18, %18 in 0 : vector<16x32xf32>, vector<16x32xf32>, vector<16x32xf32>, vector<16x32xf32>, vector<16x32xf32>, vector<16x32xf32>, vector<16x32xf32>, vector<16x32xf32> -> vector<128x32xf32>
    %26 = arith.mulf %25, %8 : vector<128x32xf32>
    %27 = arith.truncf %26 : vector<128x32xf32> to vector<128x32xbf16>
    %28 = arith.truncf %17 : vector<16x32xf32> to vector<16x32xbf16>
    %cst_17 = arith.constant dense<0.000000e+00> : vector<16x128xf32>
    %29 = tpu.matmul %28, %24, %cst_17 {dimension_numbers = #tpu.dot_dimension_numbers<[1], [0], [0], [1], [0, 0, 1, 1], [], []>} : vector<16x32xbf16>, vector<32x128xbf16>, vector<16x128xf32> -> vector<16x128xf32>
    %30 = arith.addf %29, %10 : vector<16x128xf32>
    %cst_18 = arith.constant dense<0xFF800000> : vector<16xf32>
    %31 = vector.multi_reduction <maximumf>, %30, %cst_18 [1] : vector<16x128xf32> to vector<16xf32>
    %32 = vector.shape_cast %31 : vector<16xf32> to vector<16x1xf32>
    %33 = vector.broadcast %32 : vector<16x1xf32> to vector<16x128xf32>
    %34 = arith.subf %30, %33 : vector<16x128xf32>
    %35 = math.exp %34 : vector<16x128xf32>
    %36 = arith.truncf %35 : vector<16x128xf32> to vector<16x128xbf16>
    %cst_19 = arith.constant dense<0.000000e+00> : vector<16x128xf32>
    %37 = tpu.matmul %36, %3, %cst_19 {dimension_numbers = #tpu.dot_dimension_numbers<[1], [0], [0], [1], [0, 0, 1, 1], [], []>} : vector<16x128xbf16>, vector<128x128xbf16>, vector<16x128xf32> -> vector<16x128xf32>
    %38 = arith.addf %37, %11 : vector<16x128xf32>
    %39 = tpu.reciprocal %38 {approx = true} : vector<16x128xf32> -> vector<16x128xf32>
    %40 = arith.mulf %35, %39 : vector<16x128xf32>
    %41 = arith.truncf %40 : vector<16x128xf32> to vector<16x128xbf16>
    %cst_20 = arith.constant dense<0.000000e+00> : vector<16x32xf32>
    %42 = tpu.matmul %41, %27, %cst_20 {dimension_numbers = #tpu.dot_dimension_numbers<[1], [0], [0], [1], [0, 0, 1, 1], [], []>} : vector<16x128xbf16>, vector<128x32xbf16>, vector<16x32xf32> -> vector<16x32xf32>
    %cst_21 = arith.constant 5.000000e-01 : f32
    %43 = vector.broadcast %cst_21 : f32 to vector<16x32xf32>
    %44 = arith.mulf %43, %19 : vector<16x32xf32>
    %45 = math.tanh %44 : vector<16x32xf32>
    %cst_22 = arith.constant 1.000000e+00 : f32
    %46 = vector.broadcast %cst_22 : f32 to vector<16x32xf32>
    %47 = arith.addf %46, %45 : vector<16x32xf32>
    %cst_23 = arith.constant 5.000000e-01 : f32
    %48 = vector.broadcast %cst_23 : f32 to vector<16x32xf32>
    %49 = arith.mulf %48, %47 : vector<16x32xf32>
    %50 = arith.mulf %49, %20 : vector<16x32xf32>
    %51 = arith.truncf %42 : vector<16x32xf32> to vector<16x32xbf16>
    %cst_24 = arith.constant dense<0.000000e+00> : vector<16x128xf32>
    %52 = tpu.matmul %51, %5, %cst_24 {dimension_numbers = #tpu.dot_dimension_numbers<[1], [0], [0], [1], [0, 0, 1, 1], [], []>} : vector<16x32xbf16>, vector<32x128xbf16>, vector<16x128xf32> -> vector<16x128xf32>
    %53 = arith.truncf %50 : vector<16x32xf32> to vector<16x32xbf16>
    %cst_25 = arith.constant dense<0.000000e+00> : vector<16x128xf32>
    %54 = tpu.matmul %53, %6, %cst_25 {dimension_numbers = #tpu.dot_dimension_numbers<[1], [0], [0], [1], [0, 0, 1, 1], [], []>} : vector<16x32xbf16>, vector<32x128xbf16>, vector<16x128xf32> -> vector<16x128xf32>
    %55 = arith.addf %52, %54 : vector<16x128xf32>
    %56 = vector.broadcast %13 : vector<1x128xf32> to vector<16x128xf32>
    %57 = arith.addf %55, %56 : vector<16x128xf32>
    %c0_26 = arith.constant 0 : index
    %c0_27 = arith.constant 0 : index
    %58 = vector.load %arg3[%c0_26, %c0_27] : memref<16x128xf32, #tpu.memory_space<vmem>>, vector<16x128xf32>
    tpu.vector_store %arg3[%c0_26, %c0_27], %57 {strides = array<i32>} : memref<16x128xf32, #tpu.memory_space<vmem>>, vector<16x128xf32>,
    return
  }
}

</mosaic_0001>

<bundles_post_ra>
// kernel: tile.0
= control target key start
LH: loop header
LB: loop body
LE: loop exit
PB: predicated region body
PF: predicated region fallthrough
CT: control target
= control target key end

     0   :  { %vm259_vm0 = vcmask 1047556   ;;  %vm261_vm1 = vcmask 130048   ;;  %s550_s22 = smov 80   ;;  %s551_s23 = smov 96   ;;  %vm280_vm2 = vcmask 1048448   ;;  %vm322_vm3 = vcmask 786048   ;;  %s611_s0 = inlined_call_operand.vmem [shape: bf16[16,8,16], index: 0, kind: input, shape index: {}]   ;;  %s612_s1 = inlined_call_operand.vmem [shape: bf16[16,128], index: 1, kind: output, shape index: {}]  }
   0x1   :  { %v500_v0 = vld [vmem:[%s611_s0 + $0x38] sm:$0xff]   ;;  %v501_v1 = vld [vmem:[%s611_s0 + $0x30] sm:$0xff]   ;;  %v502_v2 = vld [vmem:[%s611_s0 + $0x28] sm:$0xff]   ;;  %s552_s24 = smov 64   ;;  %s553_s25 = smov 48   ;;  %vm301_vm4 = vcmask 917248  }
   0x2   :  { %v465_v3 = vunpack.c.l.bf16 %v500_v0  ;;  %v466_v4 = vunpack.c.h.bf16 %v500_v0  ;;  %v469_v5 = vunpack.c.l.bf16 %v501_v1  ;;  %v470_v6 = vunpack.c.h.bf16 %v501_v1  ;;  %v503_v7 = vld [vmem:[%s611_s0 + $0x20] sm:$0xff]   ;;  %v504_v8 = vld [vmem:[%s611_s0 + $0x18] sm:$0xff]   ;;  %v505_v9 = vld [vmem:[%s611_s0 + $0x10] sm:$0xff]   ;;  %s554_s26 = smov 32   ;;  %s555_s27 = smov 16  }
   0x3   :  { %v473_v10 = vunpack.c.l.bf16 %v502_v2  ;;  %v474_v11 = vunpack.c.h.bf16 %v502_v2  ;;  %v477_v12 = vunpack.c.l.bf16 %v503_v7  ;;  %v478_v13 = vunpack.c.h.bf16 %v503_v7  ;;  %v506_v14 = vld [vmem:[%s611_s0 + $0x8] sm:$0xff]   ;;  %v492_v15 = vld [vmem:[%s611_s0] sm:$0xff]   ;;  %s549_s0 = smov 112  }
   0x4   :  { %20 = vst [vmem:[#allocation1 + $0x78] sm:$0xff] %v466_v4  ;;  %36 = vst [vmem:[#allocation1 + $0x70] sm:$0xff] %v465_v3  ;;  %v481_v16 = vunpack.c.l.bf16 %v504_v8  ;;  %v482_v17 = vunpack.c.h.bf16 %v504_v8  ;;  %v485_v18 = vunpack.c.l.bf16 %v505_v9  ;;  %v486_v19 = vunpack.c.h.bf16 %v505_v9 }
   0x5   :  { %52 = vst [vmem:[#allocation1 + $0x68] sm:$0xff] %v470_v6  ;;  %68 = vst [vmem:[#allocation1 + $0x60] sm:$0xff] %v469_v5  ;;  %v489_v20 = vunpack.c.l.bf16 %v506_v14  ;;  %v490_v21 = vunpack.c.h.bf16 %v506_v14  ;;  %v493_v22 = vunpack.c.l.bf16 %v492_v15  ;;  %v494_v23 = vunpack.c.h.bf16 %v492_v15 }
   0x6   :  { %84 = vst [vmem:[#allocation1 + $0x58] sm:$0xff] %v474_v11  ;;  %100 = vst [vmem:[#allocation1 + $0x50] sm:$0xff] %v473_v10  ;;  %vm343_vm5 = vcmask 654848   ;;  %vm364_vm6 = vcmask 523648   ;;  %vm385_vm7 = vcmask 392448   ;;  %vm406_vm8 = vcmask 261248  }
   0x7   :  { %116 = vst [vmem:[#allocation1 + $0x48] sm:$0xff] %v478_v13  ;;  %132 = vst [vmem:[#allocation1 + $0x40] sm:$0xff] %v477_v12 }
   0x8   :  { %148 = vst [vmem:[#allocation1 + $0x38] sm:$0xff] %v482_v17  ;;  %164 = vst [vmem:[#allocation1 + $0x30] sm:$0xff] %v481_v16 }
   0x9   :  { %180 = vst [vmem:[#allocation1 + $0x28] sm:$0xff] %v486_v19  ;;  %196 = vst [vmem:[#allocation1 + $0x20] sm:$0xff] %v485_v18 }
   0xa   :  { %212 = vst [vmem:[#allocation1 + $0x18] sm:$0xff] %v490_v21  ;;  %228 = vst [vmem:[#allocation1 + $0x10] sm:$0xff] %v489_v20 }
   0xb   :  { %243 = vst [vmem:[#allocation1 + $0x8] sm:$0xff] %v494_v23  ;;  %256 = vst [vmem:[#allocation1] sm:$0xff] %v493_v22 }
   0xc   :  { %v285_v24 = vld [vmem:[#allocation1 + $0x47] ss:$8 sm:$0xf0]   ;;  %v327_v25 = vld [vmem:[#allocation1 + $0x45] ss:$8 sm:$0xf0]  }
   0xd   :  { %v306_v42 = vld [vmem:[#allocation1 + $0x46] ss:$8 sm:$0xf0]   ;;  %v348_v49 = vld [vmem:[#allocation1 + $0x44] ss:$8 sm:$0xf0]  }
   0xe   :  { %v283_v26 = vld [vmem:[#allocation1 + $0x47] ss:$8 sm:$0xf]   ;;  %v325_v27 = vld [vmem:[#allocation1 + $0x45] ss:$8 sm:$0xf]  }
   0xf   :  { %v287_v29 = vsel %vm259_vm0, %v285_v24, %v283_v26  ;;  %v329_v31 = vsel %vm259_vm0, %v327_v25, %v325_v27  ;;  %v304_v41 = vld [vmem:[#allocation1 + $0x46] ss:$8 sm:$0xf]   ;;  %v346_v48 = vld [vmem:[#allocation1 + $0x44] ss:$8 sm:$0xf]  }
  0x10   :  { %v275_v28 = vld [vmem:[#allocation1 + $0x7] ss:$8 sm:$0xf0]   ;;  %v317_v30 = vld [vmem:[#allocation1 + $0x5] ss:$8 sm:$0xf0]   ;;  %v308_v43 = vsel %vm259_vm0, %v306_v42, %v304_v41  ;;  %v350_v50 = vsel %vm259_vm0, %v348_v49, %v346_v48 }
  0x11   :  { %v296_v37 = vld [vmem:[#allocation1 + $0x6] ss:$8 sm:$0xf0]   ;;  %v338_v45 = vld [vmem:[#allocation1 + $0x4] ss:$8 sm:$0xf0]  }
  0x12   :  { %v273_v32 = vld [vmem:[#allocation1 + $0x7] ss:$8 sm:$0xf]   ;;  %v315_v33 = vld [vmem:[#allocation1 + $0x5] ss:$8 sm:$0xf]  }
  0x13   :  { %v277_v34 = vsel %vm259_vm0, %v275_v28, %v273_v32  ;;  %v319_v35 = vsel %vm259_vm0, %v317_v30, %v315_v33  ;;  %v294_v36 = vld [vmem:[#allocation1 + $0x6] ss:$8 sm:$0xf]   ;;  %v336_v44 = vld [vmem:[#allocation1 + $0x4] ss:$8 sm:$0xf]  }
  0x14   :  { %v514_v38 = vpack.i.bf16 %v287_v29, %v277_v34  ;;  %v524_v39 = vpack.i.bf16 %v329_v31, %v319_v35  ;;  %v298_v40 = vsel %vm259_vm0, %v296_v37, %v294_v36  ;;  %v340_v47 = vsel %vm259_vm0, %v338_v45, %v336_v44  ;;  %v357_v51 = vld [vmem:[#allocation1 + $0x3] ss:$8 sm:$0xf]   ;;  %v378_v58 = vld [vmem:[#allocation1 + $0x2] ss:$8 sm:$0xf]  }
  0x15   :  { %v519_v46 = vpack.i.bf16 %v308_v43, %v298_v40  ;;  %v359_v52 = vld [vmem:[#allocation1 + $0x3] ss:$8 sm:$0xf0]   ;;  %v529_v53 = vpack.i.bf16 %v350_v50, %v340_v47  ;;  %v380_v59 = vld [vmem:[#allocation1 + $0x2] ss:$8 sm:$0xf0]  }
  0x16   :  { %515 = vrot.lane.b32.xlu0 %v514_v38, %s549_s0  ;;  %525 = vrot.lane.b32.xlu1 %v524_v39, %s550_s22  ;;  %v361_v54 = vsel %vm259_vm0, %v359_v52, %v357_v51  ;;  %v367_v55 = vld [vmem:[#allocation1 + $0x43] ss:$8 sm:$0xf]   ;;  %v382_v61 = vsel %vm259_vm0, %v380_v59, %v378_v58  ;;  %v388_v62 = vld [vmem:[#allocation1 + $0x42] ss:$8 sm:$0xf]  }
  0x17   :  { %v369_v56 = vld [vmem:[#allocation1 + $0x43] ss:$8 sm:$0xf0]   ;;  %v390_v63 = vld [vmem:[#allocation1 + $0x42] ss:$8 sm:$0xf0]  }
  0x18   :  { %v371_v57 = vsel %vm259_vm0, %v369_v56, %v367_v55  ;;  %v392_v0 = vsel %vm259_vm0, %v390_v63, %v388_v62  ;;  %v399_v1 = vld [vmem:[#allocation1 + $0x1] ss:$8 sm:$0xf]   ;;  %v257_v8 = vld [vmem:[#allocation1] ss:$8 sm:$0xf]  }
  0x19   :  { %v534_v60 = vpack.i.bf16 %v371_v57, %v361_v54  ;;  %v401_v2 = vld [vmem:[#allocation1 + $0x1] ss:$8 sm:$0xf0]   ;;  %v539_v3 = vpack.i.bf16 %v392_v0, %v382_v61  ;;  %v258_v9 = vld [vmem:[#allocation1] ss:$8 sm:$0xf0]  }
  0x1a   :  { %520 = vrot.lane.b32.xlu0 %v519_v46, %s551_s23  ;;  %530 = vrot.lane.b32.xlu1 %v529_v53, %s552_s24  ;;  %v403_v4 = vsel %vm259_vm0, %v401_v2, %v399_v1  ;;  %v409_v5 = vld [vmem:[#allocation1 + $0x41] ss:$8 sm:$0xf]   ;;  %v260_v11 = vsel %vm259_vm0, %v258_v9, %v257_v8  ;;  %v264_v12 = vld [vmem:[#allocation1 + $0x40] ss:$8 sm:$0xf]  }
  0x1b   :  { %v411_v6 = vld [vmem:[#allocation1 + $0x41] ss:$8 sm:$0xf0]   ;;  %v266_v13 = vld [vmem:[#allocation1 + $0x40] ss:$8 sm:$0xf0]  }
  0x1c   :  { %v413_v7 = vsel %vm259_vm0, %v411_v6, %v409_v5  ;;  %262 = vst.msk [vmem:[#allocation0] sm:$0xff] %vm261_vm1, %v260_v11   ;;  %v268_v14 = vsel %vm259_vm0, %v266_v13, %v264_v12 }
  0x1d   :  { %v544_v10 = vpack.i.bf16 %v413_v7, %v403_v4  ;;  %271 = vst.msk [vmem:[#allocation0 + $0x8] sm:$0xff] %vm261_vm1, %v268_v14  }
  0x1e   :  { %535 = vrot.lane.b32.xlu0 %v534_v60, %s553_s25  ;;  %540 = vrot.lane.b32.xlu1 %v539_v3, %s554_s26 }
  0x22   :  { %545 = vrot.lane.b32.xlu0 %v544_v10, %s555_s27 }
  0x88   :  { %v516_v15 = vpop.permute.xlu0 %515  ;;  %v526_v16 = vpop.permute.xlu1 %525 }
  0x89   :  { %v518_v17 = vunpack.i.h.bf16 %v516_v15  ;;  %v517_v18 = vunpack.i.l.bf16 %v516_v15  ;;  %v528_v25 = vunpack.i.h.bf16 %v526_v16  ;;  %v527_v26 = vunpack.i.l.bf16 %v526_v16 }
  0x8b   :  { %281 = vst.msk [vmem:[#allocation0] sm:$0xff] %vm280_vm2, %v517_v18   ;;  %292 = vst.msk [vmem:[#allocation0 + $0x8] sm:$0xff] %vm280_vm2, %v518_v17  }
  0x8c   :  { %v521_v19 = vpop.permute.xlu0 %520  ;;  %v531_v20 = vpop.permute.xlu1 %530 }
  0x8d   :  { %v523_v21 = vunpack.i.h.bf16 %v521_v19  ;;  %v522_v22 = vunpack.i.l.bf16 %v521_v19  ;;  %v533_v23 = vunpack.i.h.bf16 %v531_v20  ;;  %v532_v24 = vunpack.i.l.bf16 %v531_v20 }
  0x8f   :  { %302 = vst.msk [vmem:[#allocation0] sm:$0xff] %vm301_vm4, %v522_v22   ;;  %313 = vst.msk [vmem:[#allocation0 + $0x8] sm:$0xff] %vm301_vm4, %v523_v21  }
  0x90   :  { %323 = vst.msk [vmem:[#allocation0] sm:$0xff] %vm322_vm3, %v527_v26   ;;  %334 = vst.msk [vmem:[#allocation0 + $0x8] sm:$0xff] %vm322_vm3, %v528_v25   ;;  %v536_v27 = vpop.permute.xlu0 %535  ;;  %v541_v28 = vpop.permute.xlu1 %540 }
  0x91   :  { %344 = vst.msk [vmem:[#allocation0] sm:$0xff] %vm343_vm5, %v532_v24   ;;  %355 = vst.msk [vmem:[#allocation0 + $0x8] sm:$0xff] %vm343_vm5, %v533_v23   ;;  %v538_v29 = vunpack.i.h.bf16 %v536_v27  ;;  %v537_v30 = vunpack.i.l.bf16 %v536_v27  ;;  %v543_v31 = vunpack.i.h.bf16 %v541_v28  ;;  %v542_v32 = vunpack.i.l.bf16 %v541_v28 }
  0x93   :  { %365 = vst.msk [vmem:[#allocation0] sm:$0xff] %vm364_vm6, %v537_v30   ;;  %376 = vst.msk [vmem:[#allocation0 + $0x8] sm:$0xff] %vm364_vm6, %v538_v29  }
  0x94   :  { %386 = vst.msk [vmem:[#allocation0] sm:$0xff] %vm385_vm7, %v542_v32   ;;  %397 = vst.msk [vmem:[#allocation0 + $0x8] sm:$0xff] %vm385_vm7, %v543_v31   ;;  %v546_v33 = vpop.permute.xlu0 %545 }
  0x95   :  { %v548_v34 = vunpack.i.h.bf16 %v546_v33  ;;  %v547_v35 = vunpack.i.l.bf16 %v546_v33 }
  0x97   :  { %407 = vst.msk [vmem:[#allocation0] sm:$0xff] %vm406_vm8, %v547_v35   ;;  %418 = vst.msk [vmem:[#allocation0 + $0x8] sm:$0xff] %vm406_vm8, %v548_v34  }
  0x9e   :  { %v423_v36 = vld [vmem:[#allocation0] sm:$0xff]  ;;  %v428_v37 = vld [vmem:[#allocation0 + $0x8] sm:$0xff] }
  0x9f   :  { %v498_v38 = vpack.c.bf16 %v428_v37, %v423_v36 }
  0xa1   :  { %499 = vst [vmem:[%s612_s1] sm:$0xff] %v498_v38  }

</bundles_post_ra>
